<compile_context>
chip_gen: v6e
topology: v6e:2x2x1
jax: 0.10.0
libtpu: 0.0.40
codegen_flags: <defaults>
</compile_context>

<pallas_src>
import functools

import jax
import jax.numpy as jnp
from jax.experimental import pallas as pl
from jax.experimental.pallas import tpu as pltpu

LANES = 128
SUBLANES = 8  # f32 accumulator sublane count


def _xtanh_kernel(y_ref, yp_ref, o_ref, *, rows, row_tile, blocks_per_core,
                  needs_mask):
    i = pl.program_id(1)

    @pl.when(i == 0)
    def _():
        o_ref[...] = jnp.zeros_like(o_ref)

    def _accumulate(e):
        x = e * jnp.tanh(e)
        # Per-step reduce onto this core's (8, 128) partial-sum block: pure
        # vreg adds on the VPU, no cross-lane XLU work in the steady state.
        o_ref[...] += jnp.sum(
            x.reshape(row_tile // SUBLANES, SUBLANES, LANES), axis=0)

    e = y_ref[...].astype(jnp.float32) - yp_ref[...].astype(jnp.float32)

    if needs_mask:
        # Unclamped global block id (the index_map clamps the DMA so it never
        # reads fully out of bounds; the mask zeroes rows this step does not
        # own, so duplicated / overhanging rows contribute nothing).
        g = pl.program_id(0) * blocks_per_core + i
        overhang = (g + 1) * row_tile > rows

        @pl.when(jnp.logical_not(overhang))
        def _():
            _accumulate(e)

        @pl.when(overhang)
        def _():
            row_ids = g * row_tile + jax.lax.broadcasted_iota(
                jnp.int32, (row_tile, LANES), 0)
            # Mask e BEFORE tanh: select, not arithmetic, so OOB garbage
            # (possibly Inf/NaN) never propagates.
            _accumulate(jnp.where(row_ids < rows, e, 0.0))
    else:
        _accumulate(e)


def _tile_plan(max_row_tile, num_cores, vmem_limit_bytes):
    """Generation-aware defaults for (max_row_tile, num_cores, vmem_limit)."""
    try:
        kind = jax.devices()[0].device_kind.lower()
    except Exception:  # pragma: no cover - e.g. no device available yet
        kind = ""
    if "v7" in kind:
        # 2 TCs/chip, ~3.2 TB/s per TC, 64 MiB physical VMEM: 4 MiB f32 input
        # blocks (16 MiB of double-buffered inputs) + raised scoped-VMEM limit.
        d_tile, d_cores, d_vmem = 8192, 2, 48 * 1024 * 1024
    elif "v6" in kind:
        # 32 MiB default scoped VMEM easily holds 2 x 2 x 4 MiB of buffers.
        d_tile, d_cores, d_vmem = 8192, 1, None
    elif "v5e" in kind or "v5 lite" in kind or "v5lite" in kind:
        # Keep 2 x 2 x 2 MiB = 8 MiB under v5e's 16 MiB default scoped VMEM.
        d_tile, d_cores, d_vmem = 4096, 1, None
    else:
        d_tile, d_cores, d_vmem = 4096, 1, None  # conservative default
    return (max_row_tile if max_row_tile is not None else d_tile,
            num_cores if num_cores is not None else d_cores,
            vmem_limit_bytes if vmem_limit_bytes is not None else d_vmem)


def xtanh_loss(y_t, y_prime_t, *, max_row_tile=None, num_cores=None,
               vmem_limit_bytes=None):
    assert y_t.shape == y_prime_t.shape
    n = y_t.size
    itemsize = jnp.dtype(y_t.dtype).itemsize
    # Sublane packing granularity of the *storage* dtype: f32 -> 8, bf16 -> 16.
    sub = max(SUBLANES, 32 // max(itemsize, 1))

    max_row_tile, num_cores, vmem_limit_bytes = _tile_plan(
        max_row_tile, num_cores, vmem_limit_bytes)
    max_row_tile = max((max_row_tile // sub) * sub, sub)

    flat_y = jnp.ravel(y_t)          # reshape of contiguous data: no copy
    flat_yp = jnp.ravel(y_prime_t)

    min_elems = sub * LANES
    if n % LANES != 0 or n < min_elems:
        # Rare path: minimal pad so the flat buffer reshapes to (rows, 128)
        # with rows >= sub. Padded zeros contribute 0 * tanh(0) = 0; the mean
        # still divides by the true n.
        padded = max(pl.cdiv(n, LANES) * LANES, min_elems)
        flat_y = jnp.pad(flat_y, (0, padded - n))
        flat_yp = jnp.pad(flat_yp, (0, padded - n))
    else:
        padded = n                    # common case: zero-copy

    rows = padded // LANES
    y2 = flat_y.reshape(rows, LANES)
    yp2 = flat_yp.reshape(rows, LANES)

    row_tile = min(max_row_tile, (rows // sub) * sub)   # multiple of sub, >= 8
    blocks = pl.cdiv(rows, row_tile)
    num_cores = min(num_cores, blocks)
    blocks_per_core = pl.cdiv(blocks, num_cores)
    needs_mask = (num_cores * blocks_per_core * row_tile) != rows

    def in_index_map(c, i):
        # Clamp so a core's trailing step never issues a fully out-of-bounds
        # DMA; the kernel's row mask zeroes any rows the step does not own.
        return (jnp.minimum(c * blocks_per_core + i, blocks - 1), 0)

    kernel = functools.partial(
        _xtanh_kernel,
        rows=rows,
        row_tile=row_tile,
        blocks_per_core=blocks_per_core,
        needs_mask=needs_mask,
    )

    cp_kwargs = dict(dimension_semantics=("parallel", "arbitrary"))
    if vmem_limit_bytes is not None:
        cp_kwargs["vmem_limit_bytes"] = vmem_limit_bytes

    partials = pl.pallas_call(
        kernel,
        out_shape=jax.ShapeDtypeStruct((num_cores, SUBLANES, LANES),
                                       jnp.float32),
        grid_spec=pltpu.PrefetchScalarGridSpec(
            num_scalar_prefetch=0,
            grid=(num_cores, blocks_per_core),
            in_specs=[
                pl.BlockSpec((row_tile, LANES), in_index_map),
                pl.BlockSpec((row_tile, LANES), in_index_map),
            ],
            out_specs=pl.BlockSpec((None, SUBLANES, LANES),
                                   lambda c, i: (c, 0, 0)),
        ),
        compiler_params=pltpu.CompilerParams(**cp_kwargs),
        cost_estimate=pl.CostEstimate(
            flops=3 * n, transcendentals=n, bytes_accessed=2 * n * itemsize),
    )(y2, yp2)

    # Single cross-lane/sublane reduce + 1/n scale on the tiny partial sums.
    out_dtype = jnp.result_type(y_t.dtype, y_prime_t.dtype)
    return (jnp.sum(partials) * (1.0 / float(n))).astype(out_dtype)


if __name__ == "__main__":
    key = jax.random.PRNGKey(0)
    k1, k2, k3, k4 = jax.random.split(key, 4)

    def ref_loss(a, b):
        e = a.astype(jnp.float32) - b.astype(jnp.float32)
        return jnp.mean(e * jnp.tanh(e))

    # Primary small NCHW-style case (zero-copy aligned path, single block).
    shape = (2, 4, 16, 16)
    y_t = jax.random.normal(k1, shape, dtype=jnp.float32)
    y_prime_t = jax.random.normal(k2, shape, dtype=jnp.float32)
    loss = jax.block_until_ready(xtanh_loss(y_t, y_prime_t))
    ref = ref_loss(y_t, y_prime_t)
    assert jnp.allclose(loss, ref, atol=1e-5, rtol=1e-5), (loss, ref)

    # Multi-block + ragged path where n % 128 != 0 (minimal pad), forcing a
    # small row tile so several grid steps and the masked last block run.
    n2 = 300_000
    a = jax.random.normal(k3, (n2,), dtype=jnp.float32)
    b = jax.random.normal(k4, (n2,), dtype=jnp.float32)
    loss2 = jax.block_until_ready(xtanh_loss(a, b, max_row_tile=512))
    ref2 = ref_loss(a, b)
    assert jnp.allclose(loss2, ref2, atol=1e-5, rtol=1e-4), (loss2, ref2)

    # Zero-copy ragged path (n % 128 == 0, rows not a multiple of the tile)
    # plus the 2-core grid structure used on v7x (runs serially on 1-TC chips
    # and exercises the clamped fully-masked trailing block).
    n3 = 2345 * 128
    a3 = jax.random.normal(k3, (n3,), dtype=jnp.float32)
    b3 = jax.random.normal(k4, (n3,), dtype=jnp.float32)
    loss3 = jax.block_until_ready(
        xtanh_loss(a3, b3, max_row_tile=512, num_cores=2))
    ref3 = ref_loss(a3, b3)
    assert jnp.allclose(loss3, ref3, atol=1e-5, rtol=1e-4), (loss3, ref3)

    print("KERNEL_OK")
</pallas_src>

<mosaic_0001>
module attributes {stable_mosaic.version = 11 : i64} {
  func.func @_xtanh_kernel(%arg0: i32, %arg1: i32, %arg2: memref<16x128xf32, #tpu.memory_space<vmem>>, %arg3: memref<16x128xf32, #tpu.memory_space<vmem>>, %arg4: memref<1x8x128xf32, #tpu.memory_space<vmem>>) attributes {dimension_semantics = [#tpu.dimension_semantics<parallel>, #tpu.dimension_semantics<arbitrary>], iteration_bounds = array<i64: 1, 1>, scalar_prefetch = 0 : i64, scratch_operands = 0 : i64, tpu.core_type = #tpu.core_type<tc>, window_params = [{transform_indices = @transform_0, window_bounds = array<i64: 16, 128>}, {transform_indices = @transform_1, window_bounds = array<i64: 16, 128>}, {transform_indices = @transform_2, window_bounds = array<i64: 1, 8, 128>}]} {
    %c0_i32 = arith.constant 0 : i32
    %0 = arith.cmpi eq, %arg1, %c0_i32 : i32
    %1 = arith.extui %0 : i1 to i32
    %c0_i32_0 = arith.constant 0 : i32
    %2 = arith.cmpi ne, %1, %c0_i32_0 : i32
    scf.if %2 {
      %cst_10 = arith.constant 0.000000e+00 : f32
      %16 = vector.broadcast %cst_10 : f32 to vector<8x128xf32>
      %c0_11 = arith.constant 0 : index
      %c0_12 = arith.constant 0 : index
      %c0_13 = arith.constant 0 : index
      %17 = vector.load %arg4[%c0_11, %c0_12, %c0_13] : memref<1x8x128xf32, #tpu.memory_space<vmem>>, vector<1x8x128xf32>
      %18 = vector.shape_cast %17 : vector<1x8x128xf32> to vector<8x128xf32>
      %19 = vector.shape_cast %16 : vector<8x128xf32> to vector<1x8x128xf32>
      tpu.vector_store %arg4[%c0_11, %c0_12, %c0_13], %19 {strides = array<i32>} : memref<1x8x128xf32, #tpu.memory_space<vmem>>, vector<1x8x128xf32>,
    } else {
    }
    %c0 = arith.constant 0 : index
    %c0_1 = arith.constant 0 : index
    %3 = vector.load %arg2[%c0, %c0_1] : memref<16x128xf32, #tpu.memory_space<vmem>>, vector<16x128xf32>
    %c0_2 = arith.constant 0 : index
    %c0_3 = arith.constant 0 : index
    %4 = vector.load %arg3[%c0_2, %c0_3] : memref<16x128xf32, #tpu.memory_space<vmem>>, vector<16x128xf32>
    %5 = arith.subf %3, %4 : vector<16x128xf32>
    %6 = math.tanh %5 : vector<16x128xf32>
    %7 = arith.mulf %5, %6 : vector<16x128xf32>
    %c0_4 = arith.constant 0 : index
    %c0_5 = arith.constant 0 : index
    %c0_6 = arith.constant 0 : index
    %8 = vector.load %arg4[%c0_4, %c0_5, %c0_6] : memref<1x8x128xf32, #tpu.memory_space<vmem>>, vector<1x8x128xf32>
    %9 = vector.shape_cast %8 : vector<1x8x128xf32> to vector<8x128xf32>
    %10 = vector.shape_cast %7 : vector<16x128xf32> to vector<2x8x128xf32>
    %cst = arith.constant dense<0.000000e+00> : vector<8x128xf32>
    %11 = vector.multi_reduction <add>, %10, %cst [0] : vector<2x8x128xf32> to vector<8x128xf32>
    %12 = arith.addf %9, %11 : vector<8x128xf32>
    %c0_7 = arith.constant 0 : index
    %c0_8 = arith.constant 0 : index
    %c0_9 = arith.constant 0 : index
    %13 = vector.load %arg4[%c0_7, %c0_8, %c0_9] : memref<1x8x128xf32, #tpu.memory_space<vmem>>, vector<1x8x128xf32>
    %14 = vector.shape_cast %13 : vector<1x8x128xf32> to vector<8x128xf32>
    %15 = vector.shape_cast %12 : vector<8x128xf32> to vector<1x8x128xf32>
    tpu.vector_store %arg4[%c0_7, %c0_8, %c0_9], %15 {strides = array<i32>} : memref<1x8x128xf32, #tpu.memory_space<vmem>>, vector<1x8x128xf32>,
    return
  }
  func.func @transform_0(%arg0: i32, %arg1: i32) -> (i32, i32) {
    %c1_i32 = arith.constant 1 : i32
    %0 = arith.muli %arg0, %c1_i32 : i32
    %1 = arith.addi %0, %arg1 : i32
    %c0_i32 = arith.constant 0 : i32
    %2 = arith.minsi %1, %c0_i32 : i32
    %c0_i32_0 = arith.constant 0 : i32
    %c0_i32_1 = arith.constant 0 : i32
    return %2, %c0_i32_0 : i32, i32
  }
  func.func @transform_1(%arg0: i32, %arg1: i32) -> (i32, i32) {
    %c1_i32 = arith.constant 1 : i32
    %0 = arith.muli %arg0, %c1_i32 : i32
    %1 = arith.addi %0, %arg1 : i32
    %c0_i32 = arith.constant 0 : i32
    %2 = arith.minsi %1, %c0_i32 : i32
    %c0_i32_0 = arith.constant 0 : i32
    %c0_i32_1 = arith.constant 0 : i32
    return %2, %c0_i32_0 : i32, i32
  }
  func.func @transform_2(%arg0: i32, %arg1: i32) -> (i32, i32, i32) {
    %c0_i32 = arith.constant 0 : i32
    %c0_i32_0 = arith.constant 0 : i32
    %c0_i32_1 = arith.constant 0 : i32
    return %arg0, %c0_i32, %c0_i32_0 : i32, i32, i32
  }
}

</mosaic_0001>

<bundles_post_ra>
// kernel: tpu_custom_call.1
= control target key start
LH: loop header
LB: loop body
LE: loop exit
PB: predicated region body
PF: predicated region fallthrough
CT: control target
= control target key end

     0   :  { %7 = vsyncpa [#allocation3], 0  ;;  %s204_s0 = inlined_call_operand.hbm [shape: f32[16,128], index: 0, kind: input, shape index: {}]   ;;  %s205_s1 = inlined_call_operand.hbm [shape: f32[16,128], index: 1, kind: input, shape index: {}]   ;;  %s206_s2 = inlined_call_operand.hbm [shape: f32[1,8,128], index: 2, kind: output, shape index: {}]  }
   0x1   :  { %8 = vsyncpa [#allocation6], 0 }
   0x2   :  { %9 = vsyncpa [#allocation4], 0  ;;  %s175_s9 = smov [#allocation2]  }
   0x3   :  { %s21_s10 = sshll.u32 %s175_s9, 4  ;;  %s22_s10 = int_to_ptr.vmem [resolvable:$true] %s21_s10 }
   0x4   :  { %s117_s11 = scalar_lea.vmem %s22_s10, 256  ;;  %p122_p1 = scmp.lt.s32.totalorder %s22_s10, %s22_s10 }
   0x5   :  { %p118_p0 = scmp.ne.s32.totalorder %s22_s10, %s117_s11  ;;  %p123_p2 = scmp.lt.s32.totalorder %s117_s11, %s117_s11 }
   0x7   :  { %p124_p3 = por %p123_p2, %p122_p1 }
   0x9   :  { %p125_p4 = pnand %p124_p3, %p118_p0 }
   0xb   :  { %128 = shalt.err (!%p125_p4)
}
   0xc   :  { %s176_s12 = smov 128   ;;  %s177_s13 = smov 8  }
   0xd   :  { %27 = dma.hbm_to_vmem [thread:$0]  %s204_s0, 256, %s22_s10, [#allocation3], %s176_s12, %s176_s12, %s177_s13  }
   0xe   :  { %s178_s16 = smov [#allocation5]  }
   0xf   :  { %s39_s17 = sshll.u32 %s178_s16, 4  ;;  %s40_s17 = int_to_ptr.vmem [resolvable:$true] %s39_s17 }
  0x10   :  { %s137_s18 = scalar_lea.vmem %s40_s17, 256  ;;  %p142_p6 = scmp.lt.s32.totalorder %s40_s17, %s40_s17 }
  0x11   :  { %p138_p5 = scmp.ne.s32.totalorder %s40_s17, %s137_s18  ;;  %p143_p7 = scmp.lt.s32.totalorder %s137_s18, %s137_s18 }
  0x13   :  { %p144_p8 = por %p143_p7, %p142_p6 }
  0x15   :  { %p145_p9 = pnand %p144_p8, %p138_p5 }
  0x17   :  { %148 = shalt.err (!%p145_p9)
}
  0x18   :  { %45 = dma.hbm_to_vmem [thread:$0]  %s205_s1, 256, %s40_s17, [#allocation6], %s176_s12, %s176_s12, %s177_s13  }
  0x19   :  { %169 = dma.done.wait [#allocation3], 256  }
  0x1a   :  { %170 = vsyncadd [#allocation3], 4294967040 }
  0x1b   :  { %171 = dma.done.wait [#allocation6], 256  }
  0x1c   :  { %172 = vsyncadd [#allocation6], 4294967040  ;;  %v65_v0 = vld [vmem:[#allocation2] sm:$0xff]  ;;  %v66_v1 = vld [vmem:[#allocation2 + $0x8] sm:$0xff]  ;;  %s179_s0 = smov [#allocation7]  }
  0x1d   :  { %v67_v2 = vld [vmem:[#allocation5] sm:$0xff]  ;;  %v68_v3 = vld [vmem:[#allocation5 + $0x8] sm:$0xff]  ;;  %s85_s21 = sshll.u32 %s179_s0, 4  ;;  %s86_s21 = int_to_ptr.vmem [resolvable:$true] %s85_s21 }
  0x1e   :  { %v69_v4 = vsub.f32 %v65_v0, %v67_v2  ;;  %v70_v5 = vsub.f32 %v66_v1, %v68_v3  ;;  %s149_s1 = scalar_lea.vmem %s86_s21, 128  ;;  %p154_p11 = scmp.lt.s32.totalorder %s86_s21, %s86_s21 }
  0x1f   :  { %p150_p10 = scmp.ne.s32.totalorder %s86_s21, %s149_s1  ;;  %p155_p12 = scmp.lt.s32.totalorder %s149_s1, %s149_s1 }
  0x20   :  { %105 = vtanh.f32 %v69_v4 }
  0x21   :  { %107 = vtanh.f32 %v70_v5  ;;  %p156_p13 = por %p155_p12, %p154_p11 }
  0x23   :  { %p157_p0 = pnand %p156_p13, %p150_p10 }
  0x2d   :  { %v106_v6 = vpop.eup %105 }
  0x2e   :  { %v108_v7 = vpop.eup %107  ;;  %v73_v8 = vmul.f32 %v106_v6, %v69_v4 }
  0x2f   :  { %v74_v9 = vmul.f32 %v108_v7, %v70_v5 }
  0x31   :  { %v76_v10 = vadd.f32 %v74_v9, %v73_v8 }
  0x33   :  { %78 = vst [vmem:[#allocation7] sm:$0xff] %v76_v10 }
  0x34   :  { %160 = shalt.err (!%p157_p0)
}
  0x35   :  { %88 = dma.vmem_to_hbm [thread:$0]  %s86_s21, 128, %s206_s2, [#allocation4]  }
  0x36   :  { %173 = dma.done.wait [#allocation4], 128  }
  0x37   :  { %174 = vsyncadd [#allocation4], 4294967168 }
  0x38   :  { %92 = vsyncpa [#allocation3], 1 }
  0x39   :  { %93 = vsyncpa [#allocation6], 1 }
  0x3a   :  { %94 = vsyncpa [#allocation4], 1 }

</bundles_post_ra>
